<compile_context>
chip_gen: v7x
topology: tpu7x:2x2x1
jax: 0.10.0
libtpu: 0.0.40
codegen_flags: <defaults>
</compile_context>

<pallas_src>
import functools
import math

import jax
import jax.numpy as jnp
import numpy as np
from jax.experimental import pallas as pl
from jax.experimental.pallas import tpu as pltpu


def _cdiv(a, b):
    return -(-a // b)


def _round_up(x, m):
    return _cdiv(x, m) * m


def _pe_kernel(col_ref, base_ref, o_ref):
    """Compute one (TS, D_pad) slab of the sinusoidal PE table.

    col_ref : (2, D_pad)     row 0 = freq[j], row 1 = phase[j] = (j % 2) * pi/2
    base_ref: (2, C, D_pad)  [0] = sin(c * freq[j]), [1] = cos(c * freq[j])
    o_ref   : (TS, D_pad)    TS is a static multiple of C

    pe[base + c, j] = sin((base + c) * freq + phase)
                    = sinA[c, j] * cos(B[j]) + cosA[c, j] * sin(B[j])
    with B = base * freq + phase.  Only 2*D narrow transcendentals per C*D
    output elements; the bulk of the tile is 2 mul + 1 add per element.
    """
    TS, D = o_ref.shape
    C = base_ref.shape[1]
    n_chunks = TS // C          # static, <= 8 by construction
    i = pl.program_id(0)

    freq = col_ref[0:1, :]      # (1, D)
    phase = col_ref[1:2, :]     # (1, D)
    sin_a = base_ref[0]         # (C, D)
    cos_a = base_ref[1]         # (C, D)

    for k in range(n_chunks):   # static unrolled loop
        base = (i * TS + k * C).astype(jnp.float32)
        ang = base * freq + phase               # (1, D) chunk-offset angle
        sin_b = jnp.sin(ang)
        cos_b = jnp.cos(ang)
        o_ref[k * C:(k + 1) * C, :] = sin_a * cos_b + cos_a * sin_b


@functools.lru_cache(maxsize=None)
def _pe_table(seq_len, d_model):
    """Returns pe[:, :seq_len] of shape (1, seq_len, d_model), float32."""
    D_pad = _round_up(d_model, 128)             # lane-dense output columns
    seq_pad = _round_up(seq_len, 8)

    # Base-chunk rows C: ~512 KiB of f32 at D_pad wide, multiple of 8, and
    # small enough that the grid can still have >=4 steps for medium seq_len.
    C = ((512 << 10) // (4 * D_pad)) // 8 * 8
    C = max(8, min(C, 1024, seq_pad, _round_up(_cdiv(seq_pad, 4), 8)))

    n_chunks_total = _cdiv(seq_pad, C)
    # <= 8 statically-unrolled chunks per block, aim for >= 4 grid steps.
    chunks_per_step = max(1, min(8, _cdiv(_cdiv(seq_pad, 4), C), n_chunks_total))
    tile_rows = C * chunks_per_step             # multiple of 8
    grid_steps = _cdiv(seq_len, tile_rows)
    grid = (grid_steps,)

    # --- host-side constant tables (tiny; built in f64 then cast) ----------
    freq = np.zeros((D_pad,), dtype=np.float64)
    phase = np.zeros((D_pad,), dtype=np.float64)
    jj = np.arange(d_model)
    freq[:d_model] = np.exp(
        ((jj // 2) * 2).astype(np.float64) * -(math.log(10000.0) / d_model))
    phase[:d_model] = (jj % 2) * (math.pi / 2.0)
    col_tab = np.stack([freq, phase], axis=0).astype(np.float32)      # (2, D_pad)

    c = np.arange(C, dtype=np.float64)[:, None]
    ang_a = c * freq[None, :]                                          # (C, D_pad)
    base_tab = np.stack([np.sin(ang_a), np.cos(ang_a)], axis=0).astype(np.float32)

    col_tab = jnp.asarray(col_tab)
    base_tab = jnp.asarray(base_tab)

    n_trans = 2 * grid_steps * chunks_per_step * D_pad   # narrow sin/cos only
    cost = pl.CostEstimate(
        flops=3 * seq_len * D_pad + 30 * n_trans,        # 2 mul + 1 add bulk
        transcendentals=n_trans,
        bytes_accessed=4 * (seq_len * D_pad + base_tab.size + col_tab.size),
    )

    pe_2d = pl.pallas_call(
        _pe_kernel,
        out_shape=jax.ShapeDtypeStruct((seq_len, D_pad), jnp.float32),
        grid=grid,
        in_specs=[
            pl.BlockSpec((2, D_pad), lambda i: (0, 0)),
            pl.BlockSpec((2, C, D_pad), lambda i: (0, 0, 0)),
        ],
        out_specs=pl.BlockSpec((tile_rows, D_pad), lambda i: (i, 0)),
        compiler_params=pltpu.CompilerParams(
            dimension_semantics=("parallel",),
            vmem_limit_bytes=48 << 20),
        cost_estimate=cost,
    )(col_tab, base_tab)

    if D_pad != d_model:
        pe_2d = pe_2d[:, :d_model]
    return pe_2d[None, :, :]


def positional_encoding(x, d_model):
    """Forward pass of PositionalEncoding: returns pe[:, :x.shape[1]]."""
    return _pe_table(int(x.shape[1]), int(d_model))


def _reference_pe(seq_len, d_model, dtype=np.float32):
    """NumPy reference mirroring the PyTorch buffer construction."""
    pe = np.zeros((seq_len, d_model), dtype=dtype)
    position = np.arange(0, seq_len, dtype=dtype)[:, None]
    div_term = np.exp(
        np.arange(0, d_model, 2, dtype=dtype) * -(math.log(10000.0) / d_model))
    pe[:, 0::2] = np.sin(position * div_term)
    pe[:, 1::2] = np.cos(position * div_term)
    return pe[None]


if __name__ == "__main__":
    # --- spec-sized test (matches the module's forward semantics) ----------
    batch, seq_len, d_model = 2, 8, 32
    key = jax.random.PRNGKey(0)
    x = jax.random.normal(key, (batch, seq_len, d_model), dtype=jnp.float32)

    out = jax.block_until_ready(positional_encoding(x, d_model))
    ref = _reference_pe(seq_len, d_model)
    assert out.shape == (1, seq_len, d_model), out.shape
    np.testing.assert_allclose(np.asarray(out), ref, rtol=1e-5, atol=1e-5)

    # second call hits the shape cache (no new kernel launch)
    out2 = jax.block_until_ready(positional_encoding(x, d_model))
    np.testing.assert_allclose(np.asarray(out2), ref, rtol=1e-5, atol=1e-5)

    # --- structural test: multi-step grid + lane padding (96 -> 128) -------
    seq2, d2 = 160, 96
    x2 = jax.random.normal(key, (1, seq2, d2), dtype=jnp.float32)
    out_big = jax.block_until_ready(positional_encoding(x2, d2))
    ref_big = _reference_pe(seq2, d2, dtype=np.float64)
    assert out_big.shape == (1, seq2, d2), out_big.shape
    # looser tolerance: f32 sin range-reduction error grows with |angle|
    np.testing.assert_allclose(np.asarray(out_big), ref_big, rtol=0, atol=5e-4)

    print("KERNEL_OK")
</pallas_src>

<mosaic_0001>
module attributes {stable_mosaic.version = 11 : i64} {
  func.func @_pe_kernel(%arg0: i32, %arg1: memref<2x128xf32, #tpu.memory_space<vmem>>, %arg2: memref<2x8x128xf32, #tpu.memory_space<vmem>>, %arg3: memref<8x128xf32, #tpu.memory_space<vmem>>) attributes {dimension_semantics = [#tpu.dimension_semantics<parallel>], iteration_bounds = array<i64: 1>, scalar_prefetch = 0 : i64, scratch_operands = 0 : i64, tpu.core_type = #tpu.core_type<tc>, window_params = [{pipeline_mode = #tpu.pipeline_mode<synchronous>, transform_indices = @transform_0, window_bounds = array<i64: 2, 128>}, {pipeline_mode = #tpu.pipeline_mode<synchronous>, transform_indices = @transform_1, window_bounds = array<i64: 2, 8, 128>}, {transform_indices = @transform_2, window_bounds = array<i64: 8, 128>}]} {
    %c0 = arith.constant 0 : index
    %c0_0 = arith.constant 0 : index
    %0 = vector.load %arg1[%c0, %c0_0] : memref<2x128xf32, #tpu.memory_space<vmem>>, vector<1x128xf32>
    %c1 = arith.constant 1 : index
    %c0_1 = arith.constant 0 : index
    %1 = vector.load %arg1[%c1, %c0_1] : memref<2x128xf32, #tpu.memory_space<vmem>>, vector<1x128xf32>
    %c0_2 = arith.constant 0 : index
    %c0_3 = arith.constant 0 : index
    %c0_4 = arith.constant 0 : index
    %2 = vector.load %arg2[%c0_2, %c0_3, %c0_4] : memref<2x8x128xf32, #tpu.memory_space<vmem>>, vector<1x8x128xf32>
    %3 = vector.shape_cast %2 : vector<1x8x128xf32> to vector<8x128xf32>
    %c1_5 = arith.constant 1 : index
    %c0_6 = arith.constant 0 : index
    %c0_7 = arith.constant 0 : index
    %4 = vector.load %arg2[%c1_5, %c0_6, %c0_7] : memref<2x8x128xf32, #tpu.memory_space<vmem>>, vector<1x8x128xf32>
    %5 = vector.shape_cast %4 : vector<1x8x128xf32> to vector<8x128xf32>
    %c8_i32 = arith.constant 8 : i32
    %6 = arith.muli %arg0, %c8_i32 : i32
    %c0_i32 = arith.constant 0 : i32
    %7 = arith.addi %6, %c0_i32 : i32
    %8 = arith.sitofp %7 : i32 to f32
    %9 = vector.broadcast %8 : f32 to vector<1x128xf32>
    %10 = arith.mulf %9, %0 : vector<1x128xf32>
    %11 = arith.addf %10, %1 : vector<1x128xf32>
    %12 = math.sin %11 : vector<1x128xf32>
    %13 = math.cos %11 : vector<1x128xf32>
    %14 = vector.broadcast %13 : vector<1x128xf32> to vector<8x128xf32>
    %15 = arith.mulf %3, %14 : vector<8x128xf32>
    %16 = vector.broadcast %12 : vector<1x128xf32> to vector<8x128xf32>
    %17 = arith.mulf %5, %16 : vector<8x128xf32>
    %18 = arith.addf %15, %17 : vector<8x128xf32>
    %c0_8 = arith.constant 0 : index
    %c0_9 = arith.constant 0 : index
    %19 = vector.load %arg3[%c0_8, %c0_9] : memref<8x128xf32, #tpu.memory_space<vmem>>, vector<8x128xf32>
    tpu.vector_store %arg3[%c0_8, %c0_9], %18 {strides = array<i32>} : memref<8x128xf32, #tpu.memory_space<vmem>>, vector<8x128xf32>,
    return
  }
  func.func @transform_0(%arg0: i32) -> (i32, i32) {
    %c0_i32 = arith.constant 0 : i32
    %c0_i32_0 = arith.constant 0 : i32
    %c0_i32_1 = arith.constant 0 : i32
    return %c0_i32, %c0_i32_0 : i32, i32
  }
  func.func @transform_1(%arg0: i32) -> (i32, i32, i32) {
    %c0_i32 = arith.constant 0 : i32
    %c0_i32_0 = arith.constant 0 : i32
    %c0_i32_1 = arith.constant 0 : i32
    %c0_i32_2 = arith.constant 0 : i32
    return %c0_i32, %c0_i32_0, %c0_i32_1 : i32, i32, i32
  }
  func.func @transform_2(%arg0: i32) -> (i32, i32) {
    %c0_i32 = arith.constant 0 : i32
    %c0_i32_0 = arith.constant 0 : i32
    return %arg0, %c0_i32 : i32, i32
  }
}

</mosaic_0001>

<bundles_post_ra>
// kernel: tpu_custom_call.1
= control target key start
LH: loop header
LB: loop body
LE: loop exit
PB: predicated region body
PF: predicated region fallthrough
CT: control target
= control target key end

     0   :  { %7 = vsyncpa [#allocation3], 0  ;;  %s472_s0 = inlined_call_operand.hbm [shape: f32[2,128], index: 0, kind: input, shape index: {}]   ;;  %s473_s1 = inlined_call_operand.hbm [shape: f32[2,8,128], index: 1, kind: input, shape index: {}]   ;;  %s474_s2 = inlined_call_operand.hbm [shape: f32[8,128], index: 2, kind: output, shape index: {}]  }
   0x1   :  { %8 = vsyncpa [#allocation6], 0 }
   0x2   :  { %9 = vsyncpa [#allocation4], 0  ;;  %s382_s9 = smov [#allocation2]   ;;  %s383_s11 = smov [#allocation5]  }
   0x3   :  { %s16_s10 = sshll.u32 %s382_s9, 4  ;;  %s25_s12 = sshll.u32 %s383_s11, 4  ;;  %s17_s10 = int_to_ptr.vmem [resolvable:$true] %s16_s10  ;;  %s408_s12 = int_to_ptr.vmem [resolvable:$true] %s25_s12 }
   0x4   :  { %s310_s15 = scalar_lea.hbm %s472_s0, 32 }
   0x5   :  { %p311_p0 = scmp.ne.s32.totalorder %s472_s0, %s310_s15  ;;  %p314_p1 = scmp.lt.u32.totalorder %s310_s15, %s472_s0 }
   0x7   :  { %p316_p2 = pnand %p314_p1, %p311_p0 }
   0x9   :  { %319 = shalt.err (!%p316_p2)
}
   0xa   :  { %s320_s20 = scalar_lea.vmem %s17_s10, 32  ;;  %p325_p4 = scmp.lt.s32.totalorder %s17_s10, %s17_s10 }
   0xb   :  { %p321_p3 = scmp.ne.s32.totalorder %s17_s10, %s320_s20  ;;  %p326_p5 = scmp.lt.s32.totalorder %s320_s20, %s320_s20 }
   0xd   :  { %p327_p6 = por %p326_p5, %p325_p4 }
   0xf   :  { %p328_p7 = pnand %p327_p6, %p321_p3 }
  0x11   :  { %331 = shalt.err (!%p328_p7)
}
  0x12   :  { %19 = dma.hbm_to_vmem [thread:$0]  %s472_s0, 32, %s17_s10, [#allocation3]  }
  0x13   :  { %s332_s25 = scalar_lea.hbm %s473_s1, 256 }
  0x14   :  { %p333_p8 = scmp.ne.s32.totalorder %s473_s1, %s332_s25  ;;  %p336_p9 = scmp.lt.u32.totalorder %s332_s25, %s473_s1 }
  0x16   :  { %p338_p10 = pnand %p336_p9, %p333_p8 }
  0x18   :  { %341 = shalt.err (!%p338_p10)
}
  0x19   :  { %s342_s30 = scalar_lea.vmem %s408_s12, 256  ;;  %p347_p12 = scmp.lt.s32.totalorder %s408_s12, %s408_s12 }
  0x1a   :  { %p343_p11 = scmp.ne.s32.totalorder %s408_s12, %s342_s30  ;;  %p348_p13 = scmp.lt.s32.totalorder %s342_s30, %s342_s30 }
  0x1c   :  { %p349_p0 = por %p348_p13, %p347_p12 }
  0x1e   :  { %p350_p1 = pnand %p349_p0, %p343_p11 }
  0x20   :  { %353 = shalt.err (!%p350_p1)
}
  0x21   :  { %s384_s0 = smov 128   ;;  %s385_s3 = smov 8  }
  0x22   :  { %31 = dma.hbm_to_vmem [thread:$0]  %s473_s1, 256, %s408_s12, [#allocation6], %s384_s0, %s384_s0, %s385_s3  }
  0x23   :  { %376 = dma.done.wait [#allocation3], 32  }
  0x24   :  { %377 = vsyncadd [#allocation3], 4294967264 }
  0x25   :  { %378 = dma.done.wait [#allocation6], 256  }
  0x26   :  { %379 = vsyncadd [#allocation6], 4294967040  ;;  %v38_v0 = vld [vmem:[#allocation2] sm:$0x1]  ;;  %v39_v1 = vld [vmem:[#allocation2 + $0x1] sm:$0x1] }
  0x27   :  { %v46_v2 = vmul.f32 0.0, %v38_v0  ;;  %v386_v15 = vmov 683565275   ;;  %v387_v17 = vmov 2475754826   ;;  %s392_s1 = smov [#allocation7]  }
  0x28   :  { %v388_v19 = vmov 2131351028   ;;  %v389_v21 = vmov 2102212464   ;;  %v390_v23 = vmov 920167782  }
  0x29   :  { %v439_v3 = vadd.f32 %v46_v2, %v39_v1  ;;  %v391_v30 = vmov 1326507024   ;;  %s273_s6 = sshll.u32 %s392_s1, 4  ;;  %s274_s6 = int_to_ptr.vmem [resolvable:$true] %s273_s6 }
  0x2a   :  { %s354_s7 = scalar_lea.vmem %s274_s6, 128  ;;  %p359_p3 = scmp.lt.s32.totalorder %s274_s6, %s274_s6 }
  0x2b   :  { %v51_v4 = vand.u32 2139095040, %v439_v3  ;;  %v48_v6 = vand.u32 2147483647, %v439_v3  ;;  %vm50_vm7 = vcmp.lt.s32.totalorder %v439_v3, 0  ;;  %vm140_vm15 = vweird.f32 %v439_v3  ;;  %p355_p2 = scmp.ne.s32.totalorder %s274_s6, %s354_s7  ;;  %p360_p4 = scmp.lt.s32.totalorder %s354_s7, %s354_s7 }
  0x2d   :  { %v52_v5 = vshrl.u32 %v51_v4, 23  ;;  %v55_v9 = vand.u32 8388607, %v48_v6  ;;  %vm49_vm8 = vcmp.le.f32.partialorder %v48_v6, 0.7853982  ;;  %p361_p5 = por %p360_p4, %p359_p3 }
  0x2f   :  { %v283_v7 = vadd.s32 4294967169, %v52_v5  ;;  %v56_v12 = vor.u32 8388608, %v55_v9  ;;  %p362_p6 = pnand %p361_p5, %p355_p2 }
  0x31   :  { %v58_v8 = vadd.s32 1, %v283_v7  ;;  %v96_v32 = vshll.u32 %v56_v12, 8 }
  0x33   :  { %vm59_vm0 = vcmp.gt.s32.totalorder %v58_v8, 0 }
  0x34   :  { %v60_v10 = vsel %vm59_vm0, %v58_v8, 0 }
  0x35   :  { %v62_v11 = vand.u32 31, %v60_v10  ;;  %v61_v13 = vshrl.u32 %v60_v10, 5 }
  0x37   :  { %v63_v14 = vsub.s32 32, %v62_v11  ;;  %v65_v16 = vshll.u32 %v386_v15, %v62_v11  ;;  %v68_v18 = vshll.u32 %v387_v17, %v62_v11  ;;  %v71_v20 = vshll.u32 %v388_v19, %v62_v11 }
  0x38   :  { %v74_v22 = vshll.u32 %v389_v21, %v62_v11  ;;  %v77_v24 = vshll.u32 %v390_v23, %v62_v11  ;;  %vm80_vm1 = vcmp.lt.s32.totalorder %v61_v13, 1  ;;  %vm83_vm2 = vcmp.lt.s32.totalorder %v61_v13, 4 }
  0x39   :  { %v64_v25 = vshrl.u32 %v386_v15, %v63_v14  ;;  %v66_v26 = vshrl.u32 %v387_v17, %v63_v14  ;;  %v69_v27 = vshrl.u32 %v388_v19, %v63_v14  ;;  %v72_v28 = vshrl.u32 %v389_v21, %v63_v14 }
  0x3a   :  { %v75_v29 = vshrl.u32 %v390_v23, %v63_v14  ;;  %v78_v31 = vshrl.u32 %v391_v30, %v63_v14  ;;  %vm81_vm3 = vcmp.lt.s32.totalorder %v61_v13, 2  ;;  %vm82_vm4 = vcmp.lt.s32.totalorder %v61_v13, 3 }
  0x3b   :  { %v67_v33 = vor.u32 %v66_v26, %v65_v16  ;;  %v70_v34 = vor.u32 %v69_v27, %v68_v18  ;;  %v73_v35 = vor.u32 %v72_v28, %v71_v20 }
  0x3c   :  { %v76_v36 = vor.u32 %v75_v29, %v74_v22  ;;  %v79_v37 = vor.u32 %v78_v31, %v77_v24  ;;  %v255_v24 = vlaneseq }
  0x3d   :  { %v84_v38 = vsel %vm80_vm1, %v64_v25, %v67_v33  ;;  %v85_v39 = vsel %vm83_vm2, %v73_v35, 2102212464  ;;  %v88_v40 = vsel %vm80_vm1, %v67_v33, %v70_v34  ;;  %v92_v41 = vsel %vm80_vm1, %v70_v34, %v73_v35 }
  0x3e   :  { %v86_v42 = vsel %vm82_vm4, %v70_v34, %v85_v39  ;;  %v89_v43 = vsel %vm83_vm2, %v76_v36, 920167782  ;;  %v93_v44 = vsel %vm83_vm2, %v79_v37, 1326507024  ;;  %v256_v27 = vshrl.u32 %v255_v24, 7  ;;  %v42_v39 = vld [vmem:[#allocation5 + $0x8] sm:$0xff] }
  0x3f   :  { %v90_v45 = vsel %vm82_vm4, %v73_v35, %v89_v43  ;;  %v94_v46 = vsel %vm82_vm4, %v76_v36, %v93_v44  ;;  %v87_v47 = vsel %vm81_vm3, %v84_v38, %v86_v42  ;;  %v40_v38 = vld [vmem:[#allocation5] sm:$0xff] }
  0x40   :  { %v91_v48 = vsel %vm81_vm3, %v88_v40, %v90_v45  ;;  %v95_v49 = vsel %vm81_vm3, %v92_v41, %v94_v46  ;;  %v103_v54 = vmul.u32 %v96_v32, %v87_v47  ;;  %v257_v33 = vsub.s32 0, %v256_v27 }
  0x41   :  { %v445_v50 = vmul.u32.u64.low %v96_v32, %v95_v49  ;;  %v446_v51 = vmul.u32.u64.high %v96_v32, %v95_v49, %v445_v50  ;;  %v448_v52 = vmul.u32.u64.low %v96_v32, %v91_v48  ;;  %v449_v53 = vmul.u32.u64.high %v96_v32, %v91_v48, %v448_v52 }
  0x43   :  { %vm105_vm5 = vc.u32 %v446_v51, %v448_v52  ;;  %v106_v55 = vadd.s32 1, %v449_v53  ;;  %v104_v2 = vadd.s32 %v448_v52, %v446_v51 }
  0x45   :  { %v107_v56 = vsel %vm105_vm5, %v106_v55, %v449_v53 }
  0x46   :  { %v108_v57 = vadd.s32 %v107_v56, %v103_v54 }
  0x48   :  { %v109_v58 = vadd.s32 536870912, %v108_v57 }
  0x4a   :  { %v110_v59 = vshrl.u32 %v109_v58, 30 }
  0x4c   :  { %v111_v60 = vshll.u32 %v110_v59, 30  ;;  %v134_v16 = vsub.s32 4, %v110_v59 }
  0x4e   :  { %v112_v61 = vsub.s32 %v108_v57, %v111_v60  ;;  %v135_v19 = vsel %vm50_vm7, %v134_v16, %v110_v59 }
  0x4f   :  { %v137_v22 = vsel %vm49_vm8, 0, %v135_v19 }
  0x50   :  { %v114_v62 = vsub.s32 0, %v112_v61  ;;  %v141_v23 = vadd.s32 3, %v137_v22  ;;  %v245_v26 = vand.u32 3, %v137_v22 }
  0x52   :  { %v284_v63 = vmin.u32 %v114_v62, %v112_v61  ;;  %v142_v25 = vand.u32 3, %v141_v23  ;;  %vm250_vm10 = vcmp.eq.s32.totalorder %v245_v26, 2  ;;  %vm247_vm12 = vcmp.eq.s32.totalorder %v245_v26, 0 }
  0x53   :  { %vm246_vm14 = vcmp.lt.s32.totalorder %v245_v26, 2 }
  0x54   :  { %v116_v0 = vclz %v284_v63  ;;  %vm147_vm9 = vcmp.eq.s32.totalorder %v142_v25, 2  ;;  %vm144_vm11 = vcmp.eq.s32.totalorder %v142_v25, 0  ;;  %vm143_vm13 = vcmp.lt.s32.totalorder %v142_v25, 2 }
  0x56   :  { %v285_v1 = vadd.s32 4294967294, %v116_v0 }
  0x58   :  { %vm286_vm6 = vcmp.lt.s32.totalorder %v285_v1, 0 }
  0x59   :  { %v119_v4 = vsel %vm286_vm6, 0, %v285_v1 }
  0x5a   :  { %v120_v5 = vsub.s32 32, %v119_v4  ;;  %v121_v7 = vshll.u32 %v112_v61, %v119_v4  ;;  %v124_v8 = vsub.s32 4294967266, %v119_v4 }
  0x5c   :  { %v122_v9 = vshrl.u32 %v104_v2, %v120_v5  ;;  %v125_v10 = vadd.s32 127, %v124_v8 }
  0x5e   :  { %v123_v11 = vor.u32 %v122_v9, %v121_v7  ;;  %v126_v12 = vshll.u32 %v125_v10, 23 }
  0x60   :  { %v127_v13 = vor.u32 4788187, %v126_v12  ;;  %v130_v14 = vcvt.s32.f32 %v123_v11 }
  0x62   :  { %v128_v15 = vand.u32 2147483647, %v127_v13 }
  0x64   :  { %v131_v17 = vmul.f32 %v130_v14, %v128_v15 }
  0x66   :  { %v132_v18 = vxor.u32 2147483648, %v131_v17 }
  0x68   :  { %v133_v20 = vsel %vm50_vm7, %v132_v18, %v131_v17 }
  0x69   :  { %v136_v21 = vsel %vm49_vm8, %v439_v3, %v133_v20 }
  0x6a   :  { %306 = vcosq.f32 %v136_v21 }
  0x6b   :  { %308 = vsinq.f32 %v136_v21 }
  0x74   :  { %v307_v28 = vpop.eup %306 }
  0x75   :  { %v309_v29 = vpop.eup %308  ;;  %v148_v30 = vxor.u32 2147483648, %v307_v28 }
  0x76   :  { %v145_v6 = vxor.u32 2147483648, %v309_v29 }
  0x77   :  { %v149_v31 = vsel %vm147_vm9, %v148_v30, %v309_v29  ;;  %v252_v32 = vsel %vm250_vm10, %v148_v30, %v309_v29 }
  0x78   :  { %v146_v34 = vsel %vm144_vm11, %v307_v28, %v145_v6  ;;  %v249_v35 = vsel %vm247_vm12, %v307_v28, %v145_v6 }
  0x79   :  { %v150_v36 = vsel %vm143_vm13, %v146_v34, %v149_v31  ;;  %v253_v37 = vsel %vm246_vm14, %v249_v35, %v252_v32 }
  0x7a   :  { %v151_v40 = vsel %vm140_vm15, nan, %v150_v36  ;;  %v254_v41 = vsel %vm140_vm15, nan, %v253_v37 }
  0x7b   :  { %v258_v42 = vrot.slane %v254_v41, %v257_v33  ;;  %v263_v43 = vrot.slane %v151_v40, %v257_v33 }
  0x7d   :  { %v259_v44 = vmul.f32 %v258_v42, %v40_v38  ;;  %v264_v45 = vmul.f32 %v263_v43, %v42_v39 }
  0x7f   :  { %v265_v46 = vadd.f32 %v264_v45, %v259_v44 }
  0x81   :  { %266 = vst [vmem:[#allocation7] sm:$0xff] %v265_v46 }
  0x82   :  { %365 = shalt.err (!%p362_p6)
}
  0x83   :  { %s366_s10 = scalar_lea.hbm %s474_s2, 128 }
  0x84   :  { %p367_p7 = scmp.ne.s32.totalorder %s474_s2, %s366_s10  ;;  %p370_p8 = scmp.lt.u32.totalorder %s366_s10, %s474_s2 }
  0x86   :  { %p372_p9 = pnand %p370_p8, %p367_p7 }
  0x88   :  { %375 = shalt.err (!%p372_p9)
}
  0x89   :  { %276 = dma.vmem_to_hbm [thread:$0]  %s274_s6, 128, %s474_s2, [#allocation4]  }
  0x8a   :  { %380 = dma.done.wait [#allocation4], 128  }
  0x8b   :  { %381 = vsyncadd [#allocation4], 4294967168 }
  0x8c   :  { %280 = vsyncpa [#allocation3], 1 }
  0x8d   :  { %281 = vsyncpa [#allocation6], 1 }
  0x8e   :  { %282 = vsyncpa [#allocation4], 1 }

</bundles_post_ra>
